<compile_context>
chip_gen: v7x
topology: tpu7x:2x2x1
jax: 0.10.0
libtpu: 0.0.40
codegen_flags: <defaults>
</compile_context>

<pallas_src>
import jax
import jax.numpy as jnp
from jax.experimental import pallas as pl
from jax.experimental.pallas import tpu as pltpu


def _identity_kernel(x_ref, o_ref):
    # Straight pass-through of the current VMEM tile.
    o_ref[...] = x_ref[...]


def _choose_blocks(R: int, C: int, itemsize: int):
    """Pick lane-dense, VMEM-friendly block sizes for a [R, C] copy."""
    LANE = 128
    # Dense sublane packing: 8 rows for 32-bit, 16 for bf16, 32 for int8.
    sublane = max(8, 32 // max(1, itemsize))
    # ~2 MiB per tile => (in + out) x double-buffer = ~8 MiB of VMEM,
    # comfortably under the default scoped limit on v5e (16 MiB) and
    # v6e/v7x (32 MiB).  No vmem_limit_bytes override needed.
    TARGET_TILE_BYTES = 2 * 1024 * 1024

    # Lane-dense column block: take the whole last dim when it is modest
    # (full-extent blocks are always legal), otherwise a wide multiple of 128
    # and let pl.cdiv handle the ragged tail.
    MAX_COL_BLOCK = 4096  # multiple of 128
    col_block = C if C <= MAX_COL_BLOCK else MAX_COL_BLOCK

    bytes_per_row = max(1, col_block * itemsize)
    rows_target = max(sublane, TARGET_TILE_BYTES // bytes_per_row)
    rows_target = max(sublane, (rows_target // sublane) * sublane)
    # Full-extent row block when the array is small, else a sublane-aligned
    # block with the ragged tail handled by the grid.
    row_block = R if R <= rows_target else rows_target
    return row_block, col_block


def modality_out(x: jax.Array) -> jax.Array:
    """Identity forward pass (Modality_out.forward) as a Pallas TPU kernel."""
    if x.size == 0:
        return x  # nothing to move

    orig_shape = x.shape

    # Flatten to a 2-D [rows, cols] view (row-major => pure metadata).
    if x.ndim == 0:
        x2 = x.reshape(1, 1)
    elif x.ndim == 1:
        x2 = x.reshape(1, x.shape[0])
    else:
        x2 = x.reshape(-1, x.shape[-1])

    R, C = x2.shape
    itemsize = jnp.dtype(x2.dtype).itemsize
    row_block, col_block = _choose_blocks(R, C, itemsize)
    grid = (pl.cdiv(R, row_block), pl.cdiv(C, col_block))

    out2 = pl.pallas_call(
        _identity_kernel,
        out_shape=jax.ShapeDtypeStruct((R, C), x2.dtype),
        grid_spec=pltpu.PrefetchScalarGridSpec(
            num_scalar_prefetch=0,
            grid=grid,
            in_specs=[pl.BlockSpec((row_block, col_block), lambda i, j: (i, j))],
            out_specs=pl.BlockSpec((row_block, col_block), lambda i, j: (i, j)),
        ),
        compiler_params=pltpu.CompilerParams(
            dimension_semantics=("parallel", "parallel"),
        ),
        # Output aliases the input buffer: no extra HBM allocation, and when
        # the caller donates the input the copy degenerates to (near) in-place.
        input_output_aliases={0: 0},
        # Pure-bandwidth op: help the XLA scheduler overlap it with neighbors.
        cost_estimate=pl.CostEstimate(
            flops=0,
            transcendentals=0,
            bytes_accessed=2 * x.size * itemsize,
        ),
    )(x2)

    return out2.reshape(orig_shape)


if __name__ == "__main__":
    key = jax.random.PRNGKey(0)
    # Small NCHW-like input consistent with what the trainer would feed.
    x = jax.random.normal(key, (2, 4, 16, 16), dtype=jnp.float32)

    y = jax.jit(modality_out)(x)
    y = jax.block_until_ready(y)

    assert y.shape == x.shape
    assert y.dtype == x.dtype
    assert bool(jnp.all(y == x))

    print("KERNEL_OK")
</pallas_src>

<mosaic_0001>
module attributes {stable_mosaic.version = 11 : i64} {
  func.func @_identity_kernel(%arg0: i32, %arg1: i32, %arg2: memref<128x16xf32, #tpu.memory_space<vmem>>, %arg3: memref<128x16xf32, #tpu.memory_space<vmem>>) attributes {dimension_semantics = [#tpu.dimension_semantics<parallel>, #tpu.dimension_semantics<parallel>], iteration_bounds = array<i64: 1, 1>, scalar_prefetch = 0 : i64, scratch_operands = 0 : i64, tpu.core_type = #tpu.core_type<tc>, window_params = [{transform_indices = @transform_0, window_bounds = array<i64: 128, 16>}, {transform_indices = @transform_1, window_bounds = array<i64: 128, 16>}]} {
    %c0 = arith.constant 0 : index
    %c0_0 = arith.constant 0 : index
    %0 = vector.load %arg2[%c0, %c0_0] : memref<128x16xf32, #tpu.memory_space<vmem>>, vector<128x16xf32>
    %c0_1 = arith.constant 0 : index
    %c0_2 = arith.constant 0 : index
    %1 = vector.load %arg3[%c0_1, %c0_2] : memref<128x16xf32, #tpu.memory_space<vmem>>, vector<128x16xf32>
    tpu.vector_store %arg3[%c0_1, %c0_2], %0 {strides = array<i32>} : memref<128x16xf32, #tpu.memory_space<vmem>>, vector<128x16xf32>,
    return
  }
  func.func @transform_0(%arg0: i32, %arg1: i32) -> (i32, i32) {
    %c0_i32 = arith.constant 0 : i32
    return %arg0, %arg1 : i32, i32
  }
  func.func @transform_1(%arg0: i32, %arg1: i32) -> (i32, i32) {
    %c0_i32 = arith.constant 0 : i32
    return %arg0, %arg1 : i32, i32
  }
}

</mosaic_0001>

<bundles_post_ra>
// kernel: modality_out.1
= control target key start
LH: loop header
LB: loop body
LE: loop exit
PB: predicated region body
PF: predicated region fallthrough
CT: control target
= control target key end

     0   :  { %vm24_vm0 = vcmask 130048   ;;  %s167_s0 = inlined_call_operand.vmem [shape: f32[128,16], index: 0, kind: input, shape index: {}, may-alias: {0,1}]   ;;  %s168_s1 = inlined_call_operand.vmem [shape: f32[128,16], index: 1, kind: output, shape index: {}, may-alias: {0,1}]  }
   0x1   :  { %v8_v0 = vld [vmem:[%s167_s0] sm:$0xff]  ;;  %v9_v1 = vld [vmem:[%s167_s0 + $0x8] sm:$0xff]  ;;  %v10_v2 = vld [vmem:[%s167_s0 + $0x10] sm:$0xff] }
   0x2   :  { %25 = vst.msk [vmem:[%s168_s1] sm:$0xff] %vm24_vm0, %v8_v0  ;;  %26 = vst.msk [vmem:[%s168_s1 + $0x8] sm:$0xff] %vm24_vm0, %v9_v1 }
   0x3   :  { %27 = vst.msk [vmem:[%s168_s1 + $0x10] sm:$0xff] %vm24_vm0, %v10_v2 }
   0xa   :  { %v11_v3 = vld [vmem:[%s167_s0 + $0x18] sm:$0xff]  ;;  %v12_v4 = vld [vmem:[%s167_s0 + $0x20] sm:$0xff]  ;;  %v13_v5 = vld [vmem:[%s167_s0 + $0x28] sm:$0xff] }
   0xb   :  { %28 = vst.msk [vmem:[%s168_s1 + $0x18] sm:$0xff] %vm24_vm0, %v11_v3  ;;  %29 = vst.msk [vmem:[%s168_s1 + $0x20] sm:$0xff] %vm24_vm0, %v12_v4 }
   0xc   :  { %30 = vst.msk [vmem:[%s168_s1 + $0x28] sm:$0xff] %vm24_vm0, %v13_v5 }
  0x13   :  { %v14_v6 = vld [vmem:[%s167_s0 + $0x30] sm:$0xff]  ;;  %v15_v7 = vld [vmem:[%s167_s0 + $0x38] sm:$0xff]  ;;  %v16_v8 = vld [vmem:[%s167_s0 + $0x40] sm:$0xff] }
  0x14   :  { %31 = vst.msk [vmem:[%s168_s1 + $0x30] sm:$0xff] %vm24_vm0, %v14_v6  ;;  %32 = vst.msk [vmem:[%s168_s1 + $0x38] sm:$0xff] %vm24_vm0, %v15_v7 }
  0x15   :  { %33 = vst.msk [vmem:[%s168_s1 + $0x40] sm:$0xff] %vm24_vm0, %v16_v8 }
  0x1c   :  { %v17_v9 = vld [vmem:[%s167_s0 + $0x48] sm:$0xff]  ;;  %v18_v10 = vld [vmem:[%s167_s0 + $0x50] sm:$0xff]  ;;  %v19_v11 = vld [vmem:[%s167_s0 + $0x58] sm:$0xff] }
  0x1d   :  { %34 = vst.msk [vmem:[%s168_s1 + $0x48] sm:$0xff] %vm24_vm0, %v17_v9  ;;  %35 = vst.msk [vmem:[%s168_s1 + $0x50] sm:$0xff] %vm24_vm0, %v18_v10 }
  0x1e   :  { %36 = vst.msk [vmem:[%s168_s1 + $0x58] sm:$0xff] %vm24_vm0, %v19_v11 }
  0x25   :  { %v20_v12 = vld [vmem:[%s167_s0 + $0x60] sm:$0xff]  ;;  %v21_v13 = vld [vmem:[%s167_s0 + $0x68] sm:$0xff]  ;;  %v22_v14 = vld [vmem:[%s167_s0 + $0x70] sm:$0xff] }
  0x26   :  { %37 = vst.msk [vmem:[%s168_s1 + $0x60] sm:$0xff] %vm24_vm0, %v20_v12  ;;  %38 = vst.msk [vmem:[%s168_s1 + $0x68] sm:$0xff] %vm24_vm0, %v21_v13 }
  0x27   :  { %39 = vst.msk [vmem:[%s168_s1 + $0x70] sm:$0xff] %vm24_vm0, %v22_v14 }
  0x2e   :  { %v23_v15 = vld [vmem:[%s167_s0 + $0x78] sm:$0xff] }
  0x2f   :  { %40 = vst.msk [vmem:[%s168_s1 + $0x78] sm:$0xff] %vm24_vm0, %v23_v15 }

</bundles_post_ra>
